<compile_context>
chip_gen: v7x
topology: tpu7x:2x2x1
jax: 0.10.0
libtpu: 0.0.40
codegen_flags: <defaults>
</compile_context>

<pallas_src>
import functools

import jax
import jax.numpy as jnp
from jax import lax
from jax.experimental import pallas as pl
from jax.experimental.pallas import tpu as pltpu

EPS = 1e-5  # PyTorch nn.LayerNorm default eps


def _patch_expanding_kernel(x_ref, g_ref, b_ref, w_ref, o_ref, *, eps):
    # x_ref block: (1, TL, C2) -> squeeze the leading (batch) block dim.
    x = x_ref[0].astype(jnp.float32)                       # (TL, C2)

    # --- LayerNorm over the channel axis (last dim -> lanes) ---------------
    mean = jnp.mean(x, axis=-1, keepdims=True)             # (TL, 1)
    xc = x - mean
    var = jnp.mean(xc * xc, axis=-1, keepdims=True)        # biased variance
    xn = xc * lax.rsqrt(var + eps)
    xn = xn * g_ref[...] + b_ref[...]                      # (1, C2) broadcast

    # --- Linear(C2 -> C2, bias=False): y = x_norm @ W^T  (MXU) -------------
    y = jnp.dot(xn, w_ref[...], preferred_element_type=jnp.float32)
    o_ref[0] = y.astype(o_ref.dtype)


def _pick_seq_tile(l2):
    # Largest tile <= 512 (multiple of 8) that evenly divides the sequence.
    for cand in (512, 256, 128, 64, 32, 16, 8):
        if l2 % cand == 0:
            return cand
    return l2  # fall back to a full-extent block (toy / odd sizes)


def patch_expanding_pallas(x, gamma, beta, w, *, eps=EPS, seq_tile=None):
    """x: (B, L, C).  gamma, beta: (C//2,) LayerNorm affine.
       w: (C//2, C//2) nn.Linear weight (out_features, in_features), no bias.
       Returns (B, 2L, C//2)."""
    B, L, C = x.shape
    assert C % 2 == 0, "PatchExpanding requires even channel count"
    C2 = C // 2
    L2 = 2 * L

    # view(-1, 2L, C/2): contiguous reinterpretation -> free wrapper reshape.
    xr = x.reshape(B, L2, C2)
    w_t = jnp.transpose(w)            # (C2, C2) so that y = x_norm @ W^T
    g2 = gamma.reshape(1, C2)
    b2 = beta.reshape(1, C2)

    tl = _pick_seq_tile(L2) if seq_tile is None else seq_tile
    assert L2 % tl == 0
    grid = (B, L2 // tl)

    kernel = functools.partial(_patch_expanding_kernel, eps=eps)

    return pl.pallas_call(
        kernel,
        out_shape=jax.ShapeDtypeStruct((B, L2, C2), x.dtype),
        grid_spec=pltpu.PrefetchScalarGridSpec(
            num_scalar_prefetch=0,
            grid=grid,
            in_specs=[
                pl.BlockSpec((1, tl, C2), lambda b, l: (b, l, 0)),   # x tile
                pl.BlockSpec((1, C2), lambda b, l: (0, 0)),          # gamma
                pl.BlockSpec((1, C2), lambda b, l: (0, 0)),          # beta
                pl.BlockSpec((C2, C2), lambda b, l: (0, 0)),         # W^T
            ],
            out_specs=pl.BlockSpec((1, tl, C2), lambda b, l: (b, l, 0)),
        ),
        compiler_params=pltpu.CompilerParams(
            dimension_semantics=("parallel", "parallel")),
    )(xr, g2, b2, w_t)


def patch_expanding_ref(x, gamma, beta, w, eps=EPS):
    """Pure-JAX reference mirroring the PyTorch PatchExpanding forward."""
    B, L, C = x.shape
    C2 = C // 2
    xr = x.reshape(B, 2 * L, C2).astype(jnp.float32)
    mean = xr.mean(axis=-1, keepdims=True)
    var = ((xr - mean) ** 2).mean(axis=-1, keepdims=True)
    xn = (xr - mean) / jnp.sqrt(var + eps) * gamma + beta
    return (xn @ w.T.astype(jnp.float32)).astype(x.dtype)


if __name__ == "__main__":
    # dim = C = 16 -> normalized/linear width C//2 = 8; seq doubles 8 -> 16.
    B, L, C = 2, 8, 16
    key = jax.random.PRNGKey(0)
    kx, kg, kb, kw = jax.random.split(key, 4)

    x = jax.random.normal(kx, (B, L, C), jnp.float32)
    gamma = 1.0 + 0.1 * jax.random.normal(kg, (C // 2,), jnp.float32)
    beta = 0.1 * jax.random.normal(kb, (C // 2,), jnp.float32)
    w = 0.3 * jax.random.normal(kw, (C // 2, C // 2), jnp.float32)  # (out,in)

    out = patch_expanding_pallas(x, gamma, beta, w)
    out = jax.block_until_ready(out)

    ref = patch_expanding_ref(x, gamma, beta, w)
    assert out.shape == (B, 2 * L, C // 2)
    assert jnp.allclose(out, ref, atol=1e-5, rtol=1e-5), "mismatch vs reference"

    print("KERNEL_OK")
</pallas_src>

<mosaic_0001>
module attributes {stable_mosaic.version = 11 : i64} {
  func.func @_patch_expanding_kernel(%arg0: i32, %arg1: i32, %arg2: memref<1x16x8xf32, #tpu.memory_space<vmem>>, %arg3: memref<1x8xf32, #tpu.memory_space<vmem>>, %arg4: memref<1x8xf32, #tpu.memory_space<vmem>>, %arg5: memref<8x8xf32, #tpu.memory_space<vmem>>, %arg6: memref<1x16x8xf32, #tpu.memory_space<vmem>>) attributes {dimension_semantics = [#tpu.dimension_semantics<parallel>, #tpu.dimension_semantics<parallel>], iteration_bounds = array<i64: 2, 1>, scalar_prefetch = 0 : i64, scratch_operands = 0 : i64, tpu.core_type = #tpu.core_type<tc>, window_params = [{transform_indices = @transform_0, window_bounds = array<i64: 1, 16, 8>}, {pipeline_mode = #tpu.pipeline_mode<synchronous>, transform_indices = @transform_1, window_bounds = array<i64: 1, 8>}, {pipeline_mode = #tpu.pipeline_mode<synchronous>, transform_indices = @transform_2, window_bounds = array<i64: 1, 8>}, {pipeline_mode = #tpu.pipeline_mode<synchronous>, transform_indices = @transform_3, window_bounds = array<i64: 8, 8>}, {transform_indices = @transform_4, window_bounds = array<i64: 1, 16, 8>}]} {
    %c0 = arith.constant 0 : index
    %c0_0 = arith.constant 0 : index
    %c0_1 = arith.constant 0 : index
    %0 = vector.load %arg2[%c0, %c0_0, %c0_1] : memref<1x16x8xf32, #tpu.memory_space<vmem>>, vector<1x16x8xf32>
    %1 = vector.shape_cast %0 : vector<1x16x8xf32> to vector<16x8xf32>
    %cst = arith.constant dense<0.000000e+00> : vector<16xf32>
    %2 = vector.multi_reduction <add>, %1, %cst [1] : vector<16x8xf32> to vector<16xf32>
    %3 = vector.shape_cast %2 : vector<16xf32> to vector<16x1xf32>
    %cst_2 = arith.constant 8.000000e+00 : f32
    %4 = vector.broadcast %cst_2 : f32 to vector<16x1xf32>
    %5 = arith.divf %3, %4 : vector<16x1xf32>
    %6 = vector.broadcast %5 : vector<16x1xf32> to vector<16x8xf32>
    %7 = arith.subf %1, %6 : vector<16x8xf32>
    %8 = arith.mulf %7, %7 : vector<16x8xf32>
    %cst_3 = arith.constant dense<0.000000e+00> : vector<16xf32>
    %9 = vector.multi_reduction <add>, %8, %cst_3 [1] : vector<16x8xf32> to vector<16xf32>
    %10 = vector.shape_cast %9 : vector<16xf32> to vector<16x1xf32>
    %cst_4 = arith.constant 8.000000e+00 : f32
    %11 = vector.broadcast %cst_4 : f32 to vector<16x1xf32>
    %12 = arith.divf %10, %11 : vector<16x1xf32>
    %cst_5 = arith.constant 9.99999974E-6 : f32
    %13 = vector.broadcast %cst_5 : f32 to vector<16x1xf32>
    %14 = arith.addf %12, %13 : vector<16x1xf32>
    %15 = math.rsqrt %14 : vector<16x1xf32>
    %16 = vector.broadcast %15 : vector<16x1xf32> to vector<16x8xf32>
    %17 = arith.mulf %7, %16 : vector<16x8xf32>
    %c0_6 = arith.constant 0 : index
    %c0_7 = arith.constant 0 : index
    %18 = vector.load %arg3[%c0_6, %c0_7] : memref<1x8xf32, #tpu.memory_space<vmem>>, vector<1x8xf32>
    %19 = vector.broadcast %18 : vector<1x8xf32> to vector<16x8xf32>
    %20 = arith.mulf %17, %19 : vector<16x8xf32>
    %c0_8 = arith.constant 0 : index
    %c0_9 = arith.constant 0 : index
    %21 = vector.load %arg4[%c0_8, %c0_9] : memref<1x8xf32, #tpu.memory_space<vmem>>, vector<1x8xf32>
    %22 = vector.broadcast %21 : vector<1x8xf32> to vector<16x8xf32>
    %23 = arith.addf %20, %22 : vector<16x8xf32>
    %c0_10 = arith.constant 0 : index
    %c0_11 = arith.constant 0 : index
    %24 = vector.load %arg5[%c0_10, %c0_11] : memref<8x8xf32, #tpu.memory_space<vmem>>, vector<8x8xf32>
    %cst_12 = arith.constant dense<0.000000e+00> : vector<16x8xf32>
    %25 = tpu.matmul %23, %24, %cst_12 {dimension_numbers = #tpu.dot_dimension_numbers<[1], [0], [0], [1], [0, 0, 1, 1], [], []>} : vector<16x8xf32>, vector<8x8xf32>, vector<16x8xf32> -> vector<16x8xf32>
    %c0_13 = arith.constant 0 : index
    %c0_14 = arith.constant 0 : index
    %c0_15 = arith.constant 0 : index
    %26 = vector.load %arg6[%c0_13, %c0_14, %c0_15] : memref<1x16x8xf32, #tpu.memory_space<vmem>>, vector<1x16x8xf32>
    %27 = vector.shape_cast %26 : vector<1x16x8xf32> to vector<16x8xf32>
    %28 = vector.shape_cast %25 : vector<16x8xf32> to vector<1x16x8xf32>
    tpu.vector_store %arg6[%c0_13, %c0_14, %c0_15], %28 {strides = array<i32>} : memref<1x16x8xf32, #tpu.memory_space<vmem>>, vector<1x16x8xf32>,
    return
  }
  func.func @transform_0(%arg0: i32, %arg1: i32) -> (i32, i32, i32) {
    %c0_i32 = arith.constant 0 : i32
    %c0_i32_0 = arith.constant 0 : i32
    return %arg0, %arg1, %c0_i32 : i32, i32, i32
  }
  func.func @transform_1(%arg0: i32, %arg1: i32) -> (i32, i32) {
    %c0_i32 = arith.constant 0 : i32
    %c0_i32_0 = arith.constant 0 : i32
    %c0_i32_1 = arith.constant 0 : i32
    return %c0_i32, %c0_i32_0 : i32, i32
  }
  func.func @transform_2(%arg0: i32, %arg1: i32) -> (i32, i32) {
    %c0_i32 = arith.constant 0 : i32
    %c0_i32_0 = arith.constant 0 : i32
    %c0_i32_1 = arith.constant 0 : i32
    return %c0_i32, %c0_i32_0 : i32, i32
  }
  func.func @transform_3(%arg0: i32, %arg1: i32) -> (i32, i32) {
    %c0_i32 = arith.constant 0 : i32
    %c0_i32_0 = arith.constant 0 : i32
    %c0_i32_1 = arith.constant 0 : i32
    return %c0_i32, %c0_i32_0 : i32, i32
  }
  func.func @transform_4(%arg0: i32, %arg1: i32) -> (i32, i32, i32) {
    %c0_i32 = arith.constant 0 : i32
    %c0_i32_0 = arith.constant 0 : i32
    return %arg0, %arg1, %c0_i32 : i32, i32, i32
  }
}

</mosaic_0001>

<bundles_post_ra>
// kernel: tpu_custom_call.1
= control target key start
LH: loop header
LB: loop body
LE: loop exit
PB: predicated region body
PF: predicated region fallthrough
CT: control target
= control target key end

     0   :  { %s558_s15 = smov 0   ;;  %s560_s16 = smov 0   ;;  %s615_s0 = inlined_call_operand.vmem [shape: f32[2,16,8], index: 0, kind: input, shape index: {}]   ;;  %s616_s1 = inlined_call_operand.vmem [shape: f32[1,8], index: 1, kind: input, shape index: {}]   ;;  %s617_s2 = inlined_call_operand.vmem [shape: f32[1,8], index: 2, kind: input, shape index: {}]   ;;  %s618_s3 = inlined_call_operand.vmem [shape: f32[8,8], index: 3, kind: input, shape index: {}]   ;;  %s619_s4 = inlined_call_operand.vmem [shape: f32[2,16,8], index: 4, kind: output, shape index: {}]  }
   0x1   :  { %s562_s17 = smov 0  }
   0x2 LB: > { %s26_s18 = sadd.s32 1, %s527_s16  ;;  %p460_p0 = scmp.ge.s32.totalorder %s531_s17, 1  ;;  %s531_s17 = sphi %s562_s17, %s14_s17   ;;  %s527_s16 = sphi %s560_s16, %s621_s16   ;;  %s523_s15 = sphi %s558_s15, %s620_s15  }
   0x3   : > { %p28_p1 = scmp.ge.s32.totalorder %s26_s18, 2  ;;  %p183_p2 = scmp.lt.s32.totalorder %s531_s17, 3 }
   0x5   : > { %s623_s18 = smov (%p28_p1, %s26_s18), 0  ;;  %p184_p3 = pnand %p460_p0, %p183_p2 }
   0x6   : > { %p218_p4 = scmp.lt.s32.totalorder (!%p184_p3), %s523_s15, 1  ;;  %vm239_vm0 = vcmask (!%p184_p3), 64512   ;;  %v285_v14 = vld [vmem:[%s618_s3] sm:$0xff] (!%p184_p3) }
   0x7   : > { %187 = sbr.rel (%p184_p3) target bundleno = 549 (0x225), region = 36  ;;  %476 = vmatprep.subr.mxu0 (!%p184_p3), %v285_v14  ;;  %v465_v22 = vld [vmem:[%s616_s1] ss:$0 sm:$0xff] (!%p184_p3) }
   0x8   : > { %477 = vmatpush3.msra.mxu0 (!%p184_p3), %v285_v14  ;;  %v466_v24 = vld [vmem:[%s617_s2] ss:$0 sm:$0xff] (!%p184_p3) }
   0xe   : > { %s625_s15 = smov (!%p218_p4, %s523_s15), 1 }
   0xf   : > { %s471_s19 = sshll.u32 %s625_s15, 4 }
  0x10   : > { %s225_s22 = scalar_lea.vmem %s615_s0, %s471_s19  ;;  %s235_s5 = scalar_lea.vmem %s619_s4, %s471_s19 }
  0x11   : > { %v237_v0 = vld [vmem:[%s225_s22] sm:$0xff]  ;;  %v238_v1 = vld [vmem:[%s225_s22 + $0x8] sm:$0xff] }
  0x12   : > { %v240_v2 = vsel %vm239_vm0, %v237_v0, 0.0  ;;  %v243_v3 = vsel %vm239_vm0, %v238_v1, 0.0 }
  0x13   : > { %241 = vadd.xlane.f32.xlu0 %v240_v2 }
  0x17   : > { %244 = vadd.xlane.f32.xlu0 %v243_v3 }
  0xa0   : > { %v242_v4 = vpop.xlane.xlu0 %241 }
  0xa1   : > { %v247_v5 = vmul.f32 0.125, %v242_v4 }
  0xa3   : > { %v249_v6 = vsub.f32 %v237_v0, %v247_v5 }
  0xa4   : > { %v245_v7 = vpop.xlane.xlu0 %244 }
  0xa5   : > { %v248_v8 = vmul.f32 0.125, %v245_v7  ;;  %v251_v9 = vmul.f32 %v249_v6, %v249_v6 }
  0xa7   : > { %v250_v10 = vsub.f32 %v238_v1, %v248_v8  ;;  %v253_v11 = vsel %vm239_vm0, %v251_v9, 0.0 }
  0xa8   : > { %254 = vadd.xlane.f32.xlu1 %v253_v11 }
  0xa9   : > { %v252_v12 = vmul.f32 %v250_v10, %v250_v10 }
  0xab   : > { %v256_v13 = vsel %vm239_vm0, %v252_v12, 0.0 }
  0xac   : > { %257 = vadd.xlane.f32.xlu1 %v256_v13 }
 0x135   : > { %v255_v15 = vpop.xlane.xlu1 %254 }
 0x136   : > { %v259_v16 = vmul.f32 0.125, %v255_v15 }
 0x138   : > { %v261_v17 = vadd.f32 1e-05, %v259_v16 }
 0x139   : > { %v258_v18 = vpop.xlane.xlu1 %257 }
 0x13a   : > { %505 = vrsqrt.f32 %v261_v17  ;;  %v260_v19 = vmul.f32 0.125, %v258_v18 }
 0x13c   : > { %v262_v20 = vadd.f32 1e-05, %v260_v19 }
 0x13e   : > { %507 = vrsqrt.f32 %v262_v20 }
 0x144   : > { %v506_v21 = vpop.eup %505 }
 0x145   : > { %v265_v23 = vmul.f32 %v506_v21, %v249_v6 }
 0x147   : > { %v274_v25 = vmul.f32 %v465_v22, %v265_v23 }
 0x148   : > { %v508_v26 = vpop.eup %507 }
 0x149   : > { %v266_v27 = vmul.f32 %v508_v26, %v250_v10  ;;  %v283_v28 = vadd.f32 %v466_v24, %v274_v25 }
 0x14b   : > { %v275_v29 = vmul.f32 %v465_v22, %v266_v27  ;;  %478 = vmatprep.mubr.msk.f32.mxu0 %vm239_vm0, %v283_v28 }
 0x14d   : > { %v284_v30 = vadd.f32 %v466_v24, %v275_v29 }
 0x14f   : > { %479 = vmatmul.mubr.msk.f32.vlgmr.msra.gmra.mrb[0].mxu0 %vm239_vm0, %v284_v30 }
 0x222   : > { %v480_v31 = vpop.f32.mrb[0].mxu0 }
 0x223   : > { %368 = vst.msk [vmem:[%s235_s5 + $0x8] sm:$0xff] %vm239_vm0, %v480_v31  ;;  %v358_v32 = vpop.f32.mrb[1].mxu0 }
 0x224   : > { %367 = vst.msk [vmem:[%s235_s5] sm:$0xff] %vm239_vm0, %v358_v32 }
 0x225 PF: > { %s14_s17 = sadd.s32 1, %s531_s17   ;;  %s620_s15 = smov %s527_s16 }
 0x226   : > { %p11_p5 = scmp.ge.s32.totalorder %s14_s17, 4   ;;  %s621_s16 = smov %s623_s18 }
 0x228   :  { %13 = sbr.rel (!%p11_p5) target bundleno = 2 (0x2), region = 66 }

</bundles_post_ra>
